<compile_context>
chip_gen: v7x
topology: tpu7x:2x2x1
jax: 0.10.0
libtpu: 0.0.40
codegen_flags: <defaults>
</compile_context>

<pallas_src>
import functools

import jax
import jax.numpy as jnp
from jax.experimental import pallas as pl
from jax.experimental.pallas import tpu as pltpu


_TARGET_STEP_BYTES = 2 * 1024 * 1024   # ~2 MiB of x per grid step (>=85% HBM roofline)


def _vmem_limit_bytes():
    """Generation-aware scoped-VMEM limit (3/4 of physical VMEM per TensorCore)."""
    try:
        cap = int(pltpu.get_tpu_info().vmem_capacity_bytes)
    except Exception:                    # fallback if the query is unavailable
        cap = 64 * 1024 * 1024           # conservative: v7x physical VMEM per TC
    return (cap * 3) // 4                # headroom for compiler-internal scratch


def _largest_divisor_leq(n, cap):
    """Largest divisor of n that is <= cap (avoids ragged batch groups)."""
    cap = max(1, min(int(n), int(cap)))
    for d in range(cap, 0, -1):
        if n % d == 0:
            return d
    return 1


def _se_fused_kernel(x_ref, w1_ref, b1_ref, w2_ref, b2_ref, out_ref, *, inv_l):
    """Fused path: squeeze -> excite MLP -> scale for a (Bb, C, L) block."""
    # Squeeze: f32 accumulation without materializing an f32 copy of the block.
    y = jnp.sum(x_ref[...], axis=2, dtype=jnp.float32) * inv_l          # (Bb, C)
    # Excite MLP (tiny; completely hidden under the DMA of the next block).
    h = jnp.dot(y, w1_ref[...], preferred_element_type=jnp.float32) + b1_ref[...]
    h = h * jax.nn.sigmoid(h)                                            # SiLU
    s = jax.nn.sigmoid(
        jnp.dot(h, w2_ref[...], preferred_element_type=jnp.float32) + b2_ref[...])
    # Scale: second read of x in its native dtype; gate cast to x.dtype so the
    # multiply stays native (no f32 slab, bf16 VALU on v6e/v7x).
    gate = s.astype(x_ref.dtype)[:, :, None]                             # (Bb, C, 1)
    out_ref[...] = (x_ref[...] * gate).astype(out_ref.dtype)


def _se_sum_kernel(x_ref, sum_ref, *, l_rem):
    """Two-pass, pass 1: accumulate raw per-channel sums (f32) in the resident
    output block.  The ragged tail is masked only on the last L tile."""
    l_idx = pl.program_id(1)

    @pl.when(l_idx == 0)
    def _init():
        sum_ref[...] = jnp.zeros_like(sum_ref)

    def _accum(xb):
        sum_ref[...] += jnp.sum(xb, axis=2, dtype=jnp.float32)[:, None, :]

    if l_rem:   # trace-time switch: only emitted when L % l_tile != 0
        is_last = l_idx == pl.num_programs(1) - 1

        @pl.when(is_last)
        def _tail():
            xb = x_ref[...]
            pos = jax.lax.broadcasted_iota(jnp.int32, xb.shape, 2)
            _accum(jnp.where(pos < l_rem, xb, jnp.zeros_like(xb)))

        @pl.when(jnp.logical_not(is_last))
        def _body():
            _accum(x_ref[...])
    else:
        _accum(x_ref[...])


def _se_scale_kernel(x_ref, gate_ref, out_ref):
    """Two-pass, pass 2: out = x * gate, native dtype, lane-dense L tiles."""
    out_ref[...] = (x_ref[...] * gate_ref[...]).astype(out_ref.dtype)


def se_layer(x, w1, b1, w2, b2, *, l_tile=None, force_two_pass=False):
    """
    x  : (B, C, L)  float32 or bfloat16
    w1 : (C, H)     transpose of PyTorch Linear(oup, hidden).weight
    b1 : (1, H)
    w2 : (H, C)     transpose of PyTorch Linear(hidden, oup).weight
    b2 : (1, C)
    """
    B, C, L = x.shape
    H = w1.shape[1]
    itemsize = jnp.dtype(x.dtype).itemsize
    inv_l = 1.0 / float(L)
    vmem_limit = _vmem_limit_bytes()

    # Fused cutoff: double-buffered in + out blocks (4x block) plus an f32-sized
    # reduction temporary for sub-f32 inputs must stay inside the VMEM limit.
    fused_cutoff = vmem_limit // (6 if itemsize < 4 else 5)
    slab_bytes = C * L * itemsize        # one batch element's (C, L) slab

    if (not force_two_pass) and slab_bytes <= fused_cutoff:
        # ---- Path 1: fused kernel, 1 read + 1 write of x. ----
        want_b = max(1, _TARGET_STEP_BYTES // max(slab_bytes, 1))
        if B >= 2:
            want_b = min(want_b, max(1, B // 2))   # keep >=2 parallel steps (megacore)
        bb = _largest_divisor_leq(B, want_b)
        grid_b = B // bb

        cost = pl.CostEstimate(
            flops=2 * B * C * L + 4 * B * C * H,
            transcendentals=2 * B * (H + C),
            bytes_accessed=2 * B * C * L * itemsize + 4 * (C * H + H + H * C + C),
        )
        return pl.pallas_call(
            functools.partial(_se_fused_kernel, inv_l=inv_l),
            out_shape=jax.ShapeDtypeStruct((B, C, L), x.dtype),
            grid=(grid_b,),
            in_specs=[pl.BlockSpec((bb, C, L), lambda b: (b, 0, 0)),
                      pl.BlockSpec((C, H), lambda b: (0, 0)),
                      pl.BlockSpec((1, H), lambda b: (0, 0)),
                      pl.BlockSpec((H, C), lambda b: (0, 0)),
                      pl.BlockSpec((1, C), lambda b: (0, 0))],
            out_specs=pl.BlockSpec((bb, C, L), lambda b: (b, 0, 0)),
            compiler_params=pltpu.CompilerParams(
                dimension_semantics=("parallel",),
                vmem_limit_bytes=vmem_limit),
            cost_estimate=cost,
        )(x, w1, b1, w2, b2)

    # ---- Path 2: two passes over x (raw sums -> jnp MLP -> scale). ----
    if l_tile is None:
        l_pad = pl.cdiv(L, 128) * 128
        l_tile = (_TARGET_STEP_BYTES // (C * itemsize)) // 128 * 128
        l_tile = max(128, min(l_tile, l_pad))      # lane-dense, sized by bytes
    num_l = pl.cdiv(L, l_tile)
    l_rem = L % l_tile

    block_bytes = C * l_tile * itemsize
    want_b = max(1, _TARGET_STEP_BYTES // max(block_bytes, 1))
    if B >= 2:
        want_b = min(want_b, max(1, B // 2))       # keep >=2 parallel batch steps
    bb = _largest_divisor_leq(B, want_b)
    grid_b = B // bb

    # Pass 1: raw per-channel sums (B, 1, C) in f32 (lane-dense, C last).
    sums = pl.pallas_call(
        functools.partial(_se_sum_kernel, l_rem=l_rem),
        out_shape=jax.ShapeDtypeStruct((B, 1, C), jnp.float32),
        grid=(grid_b, num_l),
        in_specs=[pl.BlockSpec((bb, C, l_tile), lambda b, l: (b, 0, l))],
        out_specs=pl.BlockSpec((bb, 1, C), lambda b, l: (b, 0, 0)),
        compiler_params=pltpu.CompilerParams(
            dimension_semantics=("parallel", "arbitrary"),
            vmem_limit_bytes=vmem_limit),
        cost_estimate=pl.CostEstimate(
            flops=B * C * L, transcendentals=0,
            bytes_accessed=B * C * L * itemsize + B * C * 4),
    )(x)

    # Excite MLP: one small batched op between the streaming passes (f32 math).
    y = sums[:, 0, :] * inv_l                                            # (B, C)
    h = jnp.dot(y, w1.astype(jnp.float32),
                preferred_element_type=jnp.float32) + b1.astype(jnp.float32)
    h = h * jax.nn.sigmoid(h)                                            # SiLU
    s = jax.nn.sigmoid(jnp.dot(h, w2.astype(jnp.float32),
                               preferred_element_type=jnp.float32) + b2.astype(jnp.float32))
    gate = s.astype(x.dtype)[:, :, None]                                 # (B, C, 1)

    # Pass 2: out = x * gate.  (Default double-buffering; pl.Buffered(3) on the
    # x input/output is a further tunable if profiling shows exposed DMA.)
    return pl.pallas_call(
        _se_scale_kernel,
        out_shape=jax.ShapeDtypeStruct((B, C, L), x.dtype),
        grid=(grid_b, num_l),
        in_specs=[pl.BlockSpec((bb, C, l_tile), lambda b, l: (b, 0, l)),
                  pl.BlockSpec((bb, C, 1), lambda b, l: (b, 0, 0))],
        out_specs=pl.BlockSpec((bb, C, l_tile), lambda b, l: (b, 0, l)),
        compiler_params=pltpu.CompilerParams(
            dimension_semantics=("parallel", "parallel"),
            vmem_limit_bytes=vmem_limit),
        cost_estimate=pl.CostEstimate(
            flops=B * C * L, transcendentals=0,
            bytes_accessed=2 * B * C * L * itemsize + B * C * itemsize),
    )(x, gate)


def se_layer_ref(x, w1, b1, w2, b2):
    xf = x.astype(jnp.float32)
    y = jnp.mean(xf, axis=2)
    h = y @ w1 + b1
    h = h * jax.nn.sigmoid(h)
    s = jax.nn.sigmoid(h @ w2 + b2)
    return (xf * s[:, :, None]).astype(x.dtype)


if __name__ == "__main__":
    # Module config: SELayer(inp=16, oup=8, reduction=4) -> hidden = inp // reduction = 4.
    inp, oup, reduction = 16, 8, 4
    hidden = inp // reduction
    B, C = 2, oup

    key = jax.random.PRNGKey(0)
    kx1, kx2, kw1, kb1, kw2, kb2 = jax.random.split(key, 6)

    # PyTorch Linear weight is (out, in); stored transposed here.
    w1 = jax.random.normal(kw1, (C, hidden), dtype=jnp.float32) * 0.1
    b1 = jax.random.normal(kb1, (1, hidden), dtype=jnp.float32) * 0.1
    w2 = jax.random.normal(kw2, (hidden, C), dtype=jnp.float32) * 0.1
    b2 = jax.random.normal(kb2, (1, C), dtype=jnp.float32) * 0.1

    # Path 1: fused 1R+1W kernel (f32, lane-dense L = 512).
    L1 = 512
    x1 = jax.random.normal(kx1, (B, C, L1), dtype=jnp.float32)
    out1 = jax.block_until_ready(se_layer(x1, w1, b1, w2, b2))
    ref1 = se_layer_ref(x1, w1, b1, w2, b2)
    assert out1.shape == (B, C, L1)
    assert jnp.allclose(out1, ref1, atol=1e-5, rtol=1e-5), "fused path mismatch"

    # Fused path with bf16 inputs (f32 gate math, native-dtype multiply).
    x1b = x1.astype(jnp.bfloat16)
    out1b = jax.block_until_ready(se_layer(x1b, w1, b1, w2, b2))
    ref1b = se_layer_ref(x1b, w1, b1, w2, b2)
    assert jnp.allclose(out1b.astype(jnp.float32), ref1b.astype(jnp.float32),
                        atol=5e-2, rtol=5e-2), "fused bf16 path mismatch"

    # Path 2: two-pass (sums + jnp MLP + scale) with a ragged tail
    # (576 = 4*128 + 64), as used when the (C, L) slab would not fit VMEM.
    L2 = 576
    x2 = jax.random.normal(kx2, (B, C, L2), dtype=jnp.float32)
    out2 = jax.block_until_ready(
        se_layer(x2, w1, b1, w2, b2, l_tile=128, force_two_pass=True))
    ref2 = se_layer_ref(x2, w1, b1, w2, b2)
    assert out2.shape == (B, C, L2)
    assert jnp.allclose(out2, ref2, atol=1e-5, rtol=1e-5), "two-pass path mismatch"

    print("KERNEL_OK")
</pallas_src>

<mosaic_0001>
module attributes {stable_mosaic.version = 11 : i64} {
  func.func @_se_fused_kernel(%arg0: i32, %arg1: memref<1x8x512xf32, #tpu.memory_space<vmem>>, %arg2: memref<8x4xf32, #tpu.memory_space<vmem>>, %arg3: memref<1x4xf32, #tpu.memory_space<vmem>>, %arg4: memref<4x8xf32, #tpu.memory_space<vmem>>, %arg5: memref<1x8xf32, #tpu.memory_space<vmem>>, %arg6: memref<1x8x512xf32, #tpu.memory_space<vmem>>) attributes {dimension_semantics = [#tpu.dimension_semantics<parallel>], iteration_bounds = array<i64: 2>, scalar_prefetch = 0 : i64, scratch_operands = 0 : i64, tpu.core_type = #tpu.core_type<tc>, window_params = [{transform_indices = @transform_0, window_bounds = array<i64: 1, 8, 512>}, {pipeline_mode = #tpu.pipeline_mode<synchronous>, transform_indices = @transform_1, window_bounds = array<i64: 8, 4>}, {pipeline_mode = #tpu.pipeline_mode<synchronous>, transform_indices = @transform_2, window_bounds = array<i64: 1, 4>}, {pipeline_mode = #tpu.pipeline_mode<synchronous>, transform_indices = @transform_3, window_bounds = array<i64: 4, 8>}, {pipeline_mode = #tpu.pipeline_mode<synchronous>, transform_indices = @transform_4, window_bounds = array<i64: 1, 8>}, {transform_indices = @transform_5, window_bounds = array<i64: 1, 8, 512>}]} {
    %c0 = arith.constant 0 : index
    %c0_0 = arith.constant 0 : index
    %c0_1 = arith.constant 0 : index
    %0 = vector.load %arg1[%c0, %c0_0, %c0_1] : memref<1x8x512xf32, #tpu.memory_space<vmem>>, vector<1x8x512xf32>
    %cst = arith.constant dense<0.000000e+00> : vector<1x8xf32>
    %1 = vector.multi_reduction <add>, %0, %cst [2] : vector<1x8x512xf32> to vector<1x8xf32>
    %cst_2 = arith.constant 0.001953125 : f32
    %2 = vector.broadcast %cst_2 : f32 to vector<1x8xf32>
    %3 = arith.mulf %1, %2 : vector<1x8xf32>
    %c0_3 = arith.constant 0 : index
    %c0_4 = arith.constant 0 : index
    %4 = vector.load %arg2[%c0_3, %c0_4] : memref<8x4xf32, #tpu.memory_space<vmem>>, vector<8x4xf32>
    %cst_5 = arith.constant dense<0.000000e+00> : vector<1x4xf32>
    %5 = tpu.matmul %3, %4, %cst_5 {dimension_numbers = #tpu.dot_dimension_numbers<[1], [0], [0], [1], [0, 0, 1, 1], [], []>} : vector<1x8xf32>, vector<8x4xf32>, vector<1x4xf32> -> vector<1x4xf32>
    %c0_6 = arith.constant 0 : index
    %c0_7 = arith.constant 0 : index
    %6 = vector.load %arg3[%c0_6, %c0_7] : memref<1x4xf32, #tpu.memory_space<vmem>>, vector<1x4xf32>
    %7 = arith.addf %5, %6 : vector<1x4xf32>
    %8 = arith.negf %7 : vector<1x4xf32>
    %9 = math.exp %8 : vector<1x4xf32>
    %cst_8 = arith.constant 1.000000e+00 : f32
    %10 = vector.broadcast %cst_8 : f32 to vector<1x4xf32>
    %11 = arith.addf %10, %9 : vector<1x4xf32>
    %12 = arith.divf %10, %11 : vector<1x4xf32>
    %13 = arith.mulf %7, %12 : vector<1x4xf32>
    %c0_9 = arith.constant 0 : index
    %c0_10 = arith.constant 0 : index
    %14 = vector.load %arg4[%c0_9, %c0_10] : memref<4x8xf32, #tpu.memory_space<vmem>>, vector<4x8xf32>
    %cst_11 = arith.constant dense<0.000000e+00> : vector<1x8xf32>
    %15 = tpu.matmul %13, %14, %cst_11 {dimension_numbers = #tpu.dot_dimension_numbers<[1], [0], [0], [1], [0, 0, 1, 1], [], []>} : vector<1x4xf32>, vector<4x8xf32>, vector<1x8xf32> -> vector<1x8xf32>
    %c0_12 = arith.constant 0 : index
    %c0_13 = arith.constant 0 : index
    %16 = vector.load %arg5[%c0_12, %c0_13] : memref<1x8xf32, #tpu.memory_space<vmem>>, vector<1x8xf32>
    %17 = arith.addf %15, %16 : vector<1x8xf32>
    %18 = arith.negf %17 : vector<1x8xf32>
    %19 = math.exp %18 : vector<1x8xf32>
    %cst_14 = arith.constant 1.000000e+00 : f32
    %20 = vector.broadcast %cst_14 : f32 to vector<1x8xf32>
    %21 = arith.addf %20, %19 : vector<1x8xf32>
    %22 = arith.divf %20, %21 : vector<1x8xf32>
    %23 = vector.shape_cast %22 : vector<1x8xf32> to vector<1x8x1xf32>
    %c0_15 = arith.constant 0 : index
    %c0_16 = arith.constant 0 : index
    %c0_17 = arith.constant 0 : index
    %24 = vector.load %arg1[%c0_15, %c0_16, %c0_17] : memref<1x8x512xf32, #tpu.memory_space<vmem>>, vector<1x8x512xf32>
    %25 = vector.broadcast %23 : vector<1x8x1xf32> to vector<1x8x512xf32>
    %26 = arith.mulf %24, %25 : vector<1x8x512xf32>
    %c0_18 = arith.constant 0 : index
    %c0_19 = arith.constant 0 : index
    %c0_20 = arith.constant 0 : index
    %27 = vector.load %arg6[%c0_18, %c0_19, %c0_20] : memref<1x8x512xf32, #tpu.memory_space<vmem>>, vector<1x8x512xf32>
    tpu.vector_store %arg6[%c0_18, %c0_19, %c0_20], %26 {strides = array<i32>} : memref<1x8x512xf32, #tpu.memory_space<vmem>>, vector<1x8x512xf32>,
    return
  }
  func.func @transform_0(%arg0: i32) -> (i32, i32, i32) {
    %c0_i32 = arith.constant 0 : i32
    %c0_i32_0 = arith.constant 0 : i32
    %c0_i32_1 = arith.constant 0 : i32
    return %arg0, %c0_i32, %c0_i32_0 : i32, i32, i32
  }
  func.func @transform_1(%arg0: i32) -> (i32, i32) {
    %c0_i32 = arith.constant 0 : i32
    %c0_i32_0 = arith.constant 0 : i32
    %c0_i32_1 = arith.constant 0 : i32
    return %c0_i32, %c0_i32_0 : i32, i32
  }
  func.func @transform_2(%arg0: i32) -> (i32, i32) {
    %c0_i32 = arith.constant 0 : i32
    %c0_i32_0 = arith.constant 0 : i32
    %c0_i32_1 = arith.constant 0 : i32
    return %c0_i32, %c0_i32_0 : i32, i32
  }
  func.func @transform_3(%arg0: i32) -> (i32, i32) {
    %c0_i32 = arith.constant 0 : i32
    %c0_i32_0 = arith.constant 0 : i32
    %c0_i32_1 = arith.constant 0 : i32
    return %c0_i32, %c0_i32_0 : i32, i32
  }
  func.func @transform_4(%arg0: i32) -> (i32, i32) {
    %c0_i32 = arith.constant 0 : i32
    %c0_i32_0 = arith.constant 0 : i32
    %c0_i32_1 = arith.constant 0 : i32
    return %c0_i32, %c0_i32_0 : i32, i32
  }
  func.func @transform_5(%arg0: i32) -> (i32, i32, i32) {
    %c0_i32 = arith.constant 0 : i32
    %c0_i32_0 = arith.constant 0 : i32
    %c0_i32_1 = arith.constant 0 : i32
    return %arg0, %c0_i32, %c0_i32_0 : i32, i32, i32
  }
}

</mosaic_0001>

<bundles_post_ra>
// kernel: tpu_custom_call.1
= control target key start
LH: loop header
LB: loop body
LE: loop exit
PB: predicated region body
PF: predicated region fallthrough
CT: control target
= control target key end

     0   :  { %10 = vsyncpa [#allocation3], 0  ;;  %s926_s0 = inlined_call_operand.hbm [shape: f32[2,8,512], index: 0, kind: input, shape index: {}]   ;;  %s927_s1 = inlined_call_operand.vmem [shape: f32[8,4], index: 1, kind: input, shape index: {}]   ;;  %s928_s2 = inlined_call_operand.vmem [shape: f32[1,4], index: 2, kind: input, shape index: {}]   ;;  %s929_s3 = inlined_call_operand.vmem [shape: f32[4,8], index: 3, kind: input, shape index: {}]   ;;  %s930_s4 = inlined_call_operand.vmem [shape: f32[1,8], index: 4, kind: input, shape index: {}]   ;;  %s931_s5 = inlined_call_operand.hbm [shape: f32[2,8,512], index: 5, kind: output, shape index: {}]  }
   0x1   :  { %12 = vsyncpa [#allocation3 + $0x1], 0 }
   0x2   :  { %13 = vsyncpa [#allocation4], 0 }
   0x3   :  { %15 = vsyncpa [#allocation4 + $0x1], 0  ;;  %s749_s18 = smov 0   ;;  %s751_s19 = smov 0  }
   0x4   :  { %s753_s20 = smov 0   ;;  %s755_s21 = smov 0  }
   0x5 LB: > { %s770_s22 = sadd.s32 4294967295, %s713_s21   ;;  %s526_s23 = sadd.s32 4294967294, %s713_s21   ;;  %s713_s21 = sphi %s755_s21, %s946_s21   ;;  %s709_s20 = sphi %s753_s20, %s945_s20   ;;  %s705_s19 = sphi %s751_s19, %s944_s19   ;;  %s701_s18 = sphi %s749_s18, %s943_s18  }
   0x6   : > { %s774_s24 = sadd.s32 1, %s713_s21   ;;  %s28_s25 = sadd.s32 1, %s709_s20 }
   0x7   : > { %s25_s26 = ssub.s32 %s713_s21, %s774_s24  ;;  %p35_p0 = scmp.ne.s32.totalorder %s709_s20, %s705_s19 }
   0x8   : > { %p26_p1 = scmp.eq.s32.totalorder %s25_s26, 0  ;;  %p36_p2 = scmp.eq.s32.totalorder %s713_s21, 0 }
   0x9   : > { %p41_p3 = scmp.ne.s32.totalorder %s705_s19, %s701_s18  ;;  %p42_p4 = scmp.eq.s32.totalorder %s770_s22, 0 }
   0xa   : > { %s786_s27 = scalar_select %p26_p1, %s709_s20, %s28_s25  }
   0xb   : > { %p788_p5 = por %p36_p2, %p35_p0  ;;  %p792_p6 = por %p42_p4, %p41_p3 }
   0xc   : > { %p149_p7 = scmp.eq.s32.totalorder %s770_s22, 1  ;;  %p155_p8 = scmp.eq.s32.totalorder %s526_s23, 1 }
   0xd   : > { %p573_p10 = scmp.lt.s32.totalorder %s713_s21, 2  ;;  %s187_s7 = sand.u32 1, %s709_s20  }
   0xe   : > { %p799_p11 = por %p149_p7, %p35_p0  ;;  %p803_p12 = por %p155_p8, %p41_p3 }
   0xf   : > { %s545_s8 = sshll.u32 %s713_s21, 9  ;;  %s529_s9 = sshll.u32 %s187_s7, 5 }
  0x10   : > { %s935_s30 = scalar_select %p799_p11, 1, 0 }
  0x11   : > { %s936_s6 = scalar_select %p803_p12, 1, 0 }
  0x12   : > { %s812_s12 = scalar_lea.hbm %s926_s0, %s545_s8  ;;  %s191_s13 = scalar_lea.vmem [#allocation2], %s529_s9 }
  0x13   : > { %s199_s14 = sshll.u32 %s191_s13, 4  ;;  %p816_p13 = pnand %p573_p10, %p788_p5  ;;  %s820_s14 = int_to_ptr.vmem [resolvable:$true] %s199_s14 }
  0x14   : > { %s188_s16 = scalar_lea.sflag [#allocation3], %s187_s7  ;;  %s617_s17 = scalar_lea.hbm %s812_s12, 512 }
  0x15   : > { %p618_p2 = scmp.ne.s32.totalorder %s812_s12, %s617_s17  ;;  %p619_p3 = pneg %p816_p13 }
  0x16   : > { %s622_s26 = scalar_lea.hbm %s926_s0, 1024  ;;  %p623_p5 = scmp.lt.u32.totalorder %s812_s12, %s926_s0 }
  0x17   : > { %p620_p4 = pnand %p619_p3, %p618_p2  ;;  %p624_p8 = scmp.lt.u32.totalorder %s622_s26, %s617_s17 }
  0x18   : > { %p626_p9 = scmp.lt.u32.totalorder %s617_s17, %s812_s12 }
  0x19   : > { %p621_p7 = pneg %p620_p4  ;;  %p625_p10 = por %p624_p8, %p623_p5 }
  0x1b   : > { %p627_p0 = por %p626_p9, %p625_p10 }
  0x1d   : > { %p628_p1 = pnand %p627_p0, %p621_p7 }
  0x1f   : > { %631 = shalt.err (!%p628_p1)
}
  0x20   : > { %s632_s7 = scalar_lea.vmem %s820_s14, 512  ;;  %s715_s9 = smov [#allocation2]  }
  0x21   : > { %p633_p2 = scmp.ne.s32.totalorder %s820_s14, %s632_s7  ;;  %s637_s10 = sshll.u32 %s715_s9, 4  ;;  %s638_s10 = int_to_ptr.vmem [resolvable:$false] %s637_s10 }
  0x22   : > { %s639_s11 = scalar_lea.vmem %s638_s10, 1024  ;;  %p640_p11 = scmp.lt.s32.totalorder %s820_s14, %s638_s10 }
  0x23   : > { %p635_p4 = pnand %p633_p2, %p619_p3  ;;  %p641_p5 = scmp.lt.s32.totalorder %s639_s11, %s632_s7 }
  0x25   : > { %p636_p12 = pneg %p635_p4  ;;  %p642_p8 = por %p641_p5, %p640_p11 }
  0x27   : > { %p643_p9 = pnand %p642_p8, %p636_p12 }
  0x29   : > { %646 = shalt.err (!%p643_p9)
}
  0x2a   : > { %568 = dma.hbm_to_vmem [thread:$0]  (!%p816_p13), %s812_s12, 512, %s820_s14, %s188_s16  }
  0x2b   : > { %p938_p0 = scmp.lt.s32.totalorder %s713_s21, 3  ;;  %p939_p1 = scmp.ge.s32.totalorder %s713_s21, 1 }
  0x2d   : > { %p205_p3 = pnand %p939_p1, %p938_p0 }
  0x2e   : > { %s854_s13 = sand.u32 (!%p205_p3), 1, %s705_s19  }
  0x2f   : > { %208 = sbr.rel (%p205_p3) target bundleno = 824 (0x338), region = 40  ;;  %s533_s17 = sshll.u32 (!%p205_p3), %s854_s13, 5 }
  0x30   : > { %s211_s23 = scalar_lea.sflag (!%p205_p3), [#allocation3], %s854_s13  ;;  %s214_s15 = scalar_lea.vmem (!%p205_p3), [#allocation2], %s533_s17 }
  0x36   : > { %692 = dma.done.wait (%p792_p6), %s211_s23, 512  }
  0x37   : > { %694 = vsyncadd (%p792_p6), %s211_s23, 4294966784  ;;  %v241_v0 = vld [vmem:[%s214_s15] sm:$0xff]  ;;  %v242_v1 = vld [vmem:[%s214_s15 + $0x8] sm:$0xff]  ;;  %v716_v7 = vmov 0.0   ;;  %vm717_vm0 = vmmov 0   ;;  %v254_v9 = vlaneseq  ;;  %vm260_vm1 = vcmask 64512  }
  0x38   : > { %v243_v2 = vld [vmem:[%s214_s15 + $0x10] sm:$0xff]  ;;  %v245_v3 = vadd.f32 %v242_v1, %v241_v0  ;;  %v244_v4 = vld [vmem:[%s214_s15 + $0x18] sm:$0xff]  ;;  %551 = vmatprep.subr.mxu0 %v716_v7  ;;  %v251_v8 = vld [vmem:[%s927_s1] sm:$0xff]  ;;  %556 = vmatprep.subr.mxu1 %v716_v7  ;;  %vm346_vm2 = vcmask 1043456   ;;  %vm342_vm3 = vcmask 31744   ;;  %s546_s7 = sshll.u32 %s770_s22, 9 }
  0x39   : > { %552 = vmatpush3.msra.mxu0 %v251_v8  ;;  %553 = vmatprep.mubr.msk.f32.mxu0 %vm717_vm0, %v716_v7  ;;  %v255_v10 = vand.u32 127, %v254_v9  ;;  %v257_v11 = vshrl.u32 %v254_v9, 7  ;;  %v340_v16 = vld [vmem:[%s929_s3] sm:$0xf]  ;;  %s240_s9 = scalar_lea.vmem [#allocation5], %s533_s17  ;;  %s882_s15 = scalar_lea.hbm %s931_s5, %s546_s7 }
  0x3a   : > { %v246_v5 = vadd.f32 %v245_v3, %v243_v2  ;;  %558 = vmatprep.mubr.msk.f32.mxu1 %vm717_vm0, %v716_v7  ;;  %557 = vmatpush3.msk.msra.mxu1 %vm346_vm2, %v340_v16  ;;  %v252_v17 = vld [vmem:[%s928_s2] sm:$0x1]  ;;  %s456_s10 = sshll.u32 %s240_s9, 4  ;;  %s442_s22 = scalar_lea.sflag [#allocation4], %s854_s13  ;;  %s884_s10 = int_to_ptr.vmem [resolvable:$true] %s456_s10 }
  0x3b   : > { %v258_v12 = vsub.s32 %v255_v10, %v257_v11  ;;  %v341_v26 = vld [vmem:[%s930_s4] sm:$0x1]  ;;  %v428_v33 = vsub.s32 0, %v257_v11  ;;  %s647_s17 = scalar_lea.vmem %s884_s10, 512  ;;  %p940_p11 = scmp.ne.s32.totalorder %s935_s30, 0 }
  0x3c   : > { %v247_v6 = vadd.f32 %v246_v5, %v244_v4  ;;  %p648_p6 = scmp.ne.s32.totalorder %s884_s10, %s647_s17  ;;  %s718_s12 = smov [#allocation5]  }
  0x3d   : > { %s651_s14 = sshll.u32 %s718_s12, 4  ;;  %s652_s14 = int_to_ptr.vmem [resolvable:$false] %s651_s14 }
  0x3e   : > { %248 = vadd.xlane.f32.xlu0 %v247_v6  ;;  %p649_p12 = pnand %p648_p6, %p940_p11  ;;  %s653_s29 = scalar_lea.vmem %s652_s14, 1024 }
  0x3f   : > { %p654_p7 = scmp.lt.s32.totalorder %s884_s10, %s652_s14  ;;  %p655_p10 = scmp.lt.s32.totalorder %s653_s29, %s647_s17 }
  0x40   : > { %p650_p13 = pneg %p649_p12 }
  0x41   : > { %p656_p2 = por %p655_p10, %p654_p7 }
  0x43   : > { %p657_p4 = pnand %p656_p2, %p650_p13 }
  0xcb   : > { %v249_v13 = vpop.xlane.xlu0 %248 }
  0xcc   : > { %v250_v14 = vmul.f32 0.001953125, %v249_v13 }
  0xce   : > { %v259_v15 = vrot.slane %v250_v14, %v258_v12 }
  0xd0   : > { %554 = vmatmul.mubr.msk.f32.vlgmr.msra.gmra.mrb[0].mxu0 %vm260_vm1, %v259_v15 }
 0x1a3   : > { %v329_v18 = vpop.f32.mrb[0].mxu0 }
 0x1a4   : > { %v330_v19 = vadd.f32 %v329_v18, %v252_v17  ;;  %v555_v20 = vpop.f32.mrb[1].mxu0 }
 0x1a6   : > { %v536_v21 = vmul.f32 -1.442695, %v330_v19 }
 0x1a8   : > { %609 = vpow2.f32 %v536_v21 }
 0x1b2   : > { %v610_v22 = vpop.eup %609 }
 0x1b3   : > { %v336_v23 = vadd.f32 1.0, %v610_v22 }
 0x1b5   : > { %611 = vrcp.f32 %v336_v23 }
 0x1bf   : > { %v612_v24 = vpop.eup %611 }
 0x1c0   : > { %v339_v25 = vmul.f32 %v612_v24, %v330_v19 }
 0x1c2   : > { %559 = vmatmul.mubr.msk.f32.vlgmr.msra.gmra.mrb[0].mxu1 %vm342_vm3, %v339_v25 }
 0x295   : > { %v416_v27 = vpop.f32.mrb[0].mxu1 }
 0x296   : > { %v417_v28 = vadd.f32 %v416_v27, %v341_v26  ;;  %v560_v29 = vpop.f32.mrb[1].mxu1 }
 0x298   : > { %v539_v30 = vmul.f32 -1.442695, %v417_v28 }
 0x29a   : > { %613 = vpow2.f32 %v539_v30 }
 0x2a4   : > { %v614_v31 = vpop.eup %613 }
 0x2a5   : > { %v423_v32 = vadd.f32 1.0, %v614_v31 }
 0x2a7   : > { %615 = vrcp.f32 %v423_v32 }
 0x2b1   : > { %v616_v34 = vpop.eup %615 }
 0x2b2   : > { %v429_v35 = vrot.slane %v616_v34, %v428_v33 }
 0x2b4   : > { %431 = vbcast.lane.b32.xlu0 %v429_v35, 256 }
 0x326   : > { %v432_v36 = vpop.permute.xlu0 %431 }
 0x327   : > { %v433_v37 = vmul.f32 %v432_v36, %v241_v0  ;;  %v434_v38 = vmul.f32 %v432_v36, %v242_v1  ;;  %v435_v39 = vmul.f32 %v432_v36, %v243_v2  ;;  %v436_v40 = vmul.f32 %v432_v36, %v244_v4 }
 0x329   : > { %437 = vst [vmem:[%s240_s9] sm:$0xff] %v433_v37  ;;  %438 = vst [vmem:[%s240_s9 + $0x8] sm:$0xff] %v434_v38 }
 0x32a   : > { %439 = vst [vmem:[%s240_s9 + $0x10] sm:$0xff] %v435_v39  ;;  %440 = vst [vmem:[%s240_s9 + $0x18] sm:$0xff] %v436_v40 }
 0x32b   : > { %660 = shalt.err (!%p657_p4)
}
 0x32c   : > { %s661_s13 = scalar_lea.hbm %s882_s15, 512  ;;  %s665_s26 = scalar_lea.hbm %s931_s5, 1024 }
 0x32d   : > { %p662_p5 = scmp.ne.s32.totalorder %s882_s15, %s661_s13  ;;  %p666_p0 = scmp.lt.u32.totalorder %s882_s15, %s931_s5 }
 0x32e   : > { %p667_p1 = scmp.lt.u32.totalorder %s665_s26, %s661_s13  ;;  %p669_p6 = scmp.lt.u32.totalorder %s661_s13, %s882_s15 }
 0x32f   : > { %p663_p8 = pnand %p662_p5, %p940_p11 }
 0x330   : > { %p668_p3 = por %p667_p1, %p666_p0 }
 0x331   : > { %p664_p9 = pneg %p663_p8 }
 0x332   : > { %p670_p12 = por %p669_p6, %p668_p3 }
 0x334   : > { %p671_p13 = pnand %p670_p12, %p664_p9 }
 0x336   : > { %674 = shalt.err (!%p671_p13)
}
 0x337   : > { %563 = dma.vmem_to_hbm [thread:$0]  (%p940_p11), %s884_s10, 512, %s882_s15, %s442_s22  }
 0x338 PF: > { %s468_s7 = sand.u32 1, %s701_s18   ;;  %p941_p7 = scmp.ne.s32.totalorder %s936_s6, 0 }
 0x339   : > { %p942_p10 = scmp.ge.s32.totalorder %s713_s21, 2  ;;  %s469_s9 = scalar_lea.sflag [#allocation4], %s468_s7 }
 0x33b   : > { %p570_p2 = pnand %p942_p10, %p941_p7 }
 0x33d   : > { %696 = dma.done.wait (!%p570_p2), %s469_s9, 512  }
 0x33e   : > { %698 = vsyncadd (!%p570_p2), %s469_s9, 4294966784  ;;  %p18_p4 = scmp.ge.s32.totalorder %s774_s24, 4   ;;  %s943_s18 = smov %s705_s19 }
 0x33f   : > { %s944_s19 = smov %s709_s20  ;;  %s945_s20 = smov %s786_s27 }
 0x340   : > { %s946_s21 = smov %s774_s24  ;;  %20 = sbr.rel (!%p18_p4) target bundleno = 5 (0x5), region = 85 }
 0x347   :  { %474 = vsyncpa [#allocation3], 1 }
 0x348   :  { %476 = vsyncpa [#allocation3 + $0x1], 1 }
 0x349   :  { %477 = vsyncpa [#allocation4], 1 }
 0x34a   :  { %479 = vsyncpa [#allocation4 + $0x1], 1 }

</bundles_post_ra>
